<compile_context>
chip_gen: v7x
topology: tpu7x:2x2x1
jax: 0.10.0
libtpu: 0.0.40
codegen_flags: <defaults>
</compile_context>

<pallas_src>
import functools

import jax
import jax.numpy as jnp
from jax import lax
from jax.experimental import pallas as pl
from jax.experimental.pallas import tpu as pltpu

_NCORES = 2            # leading "parallel" axis -> both TCs on v7x, sequential elsewhere
_LANE = 128
_SUBLANE = 8
_VMEM_BUDGET = 32 << 20   # per-step input+accumulator budget (fits v7x 64 MiB VMEM/TC)


def _round_up(x, m):
    return (x + m - 1) // m * m


def _bce_weighted_kernel(pred_ref, gt_ref, mask_ref,          # inputs  (N, S, tk)
                         a_ref, b_ref, m_ref,                 # outputs (1, 8, 128)
                         acc_a, acc_b, acc_m,                 # scratch (S, tk) f32
                         *, inv_n, k_inner, tk, kt_per_core, needs_mask):
    c = pl.program_id(0)          # core split (parallel axis)
    k = pl.program_id(1)          # reduction tiles (arbitrary axis)

    @pl.when(k == 0)
    def _init():
        acc_a[...] = jnp.zeros_like(acc_a)
        acc_b[...] = jnp.zeros_like(acc_b)
        acc_m[...] = jnp.zeros_like(acc_m)

    # Batch mean over the leading N axis: plain VPU adds, result stays (S, tk) dense.
    x = jnp.sum(pred_ref[...].astype(jnp.float32), axis=0) * inv_n
    z = jnp.sum(gt_ref[...].astype(jnp.float32), axis=0) * inv_n
    m = jnp.sum(mask_ref[...].astype(jnp.float32), axis=0) * inv_n

    # Numerically stable softplus: max/add on VPU, exp + log1p on EUP.
    sp_pos = jnp.maximum(x, 0.0) + jnp.log1p(jnp.exp(-jnp.abs(x)))   # softplus(x)
    sp_neg = sp_pos - x                                              # softplus(-x)

    a_term = z * sp_neg
    b_term = (1.0 - z) * sp_pos
    m_term = m

    if needs_mask:
        # Mask lanes past the end of the (flattened) feature axis, incl. whole
        # tiles assigned to a core beyond the array (they contribute exactly 0).
        lane = lax.broadcasted_iota(jnp.int32, a_term.shape, dimension=1)
        valid = (c * kt_per_core + k) * tk + lane < k_inner
        a_term = jnp.where(valid, a_term, 0.0)
        b_term = jnp.where(valid, b_term, 0.0)
        m_term = jnp.where(valid, m_term, 0.0)

    acc_a[...] += a_term
    acc_b[...] += b_term
    acc_m[...] += m_term

    @pl.when(k == kt_per_core - 1)
    def _finalize():
        a_ref[...] = jnp.broadcast_to(jnp.sum(acc_a[...]), a_ref.shape)
        b_ref[...] = jnp.broadcast_to(jnp.sum(acc_b[...]), b_ref.shape)
        m_ref[...] = jnp.broadcast_to(jnp.sum(acc_m[...]), m_ref.shape)


def bce_weighted(pred, gt, mask, *, eps=1e-5):
    """Pallas equivalent of BCE_weighted().forward(pred, gt, mask) -> scalar."""
    N, C, H, W = pred.shape
    K = C * H * W
    cnt = float(K)

    # Sublane-dense layout for small N: (N, 8, K//8) when K divides by 8, else (N, 1, K).
    # Pure metadata reshape, inputs stay in their native dtype (cast happens in VMEM).
    S = _SUBLANE if K % _SUBLANE == 0 else 1
    k_inner = K // S
    p = pred.reshape(N, S, k_inner)
    g = gt.reshape(N, S, k_inner)
    mk = mask.reshape(N, S, k_inner)

    # Lane-tile size: as large as fits the VMEM budget
    #   3 inputs x 2 pipeline buffers x N x 8 sublanes x itemsize  +  3 f32 accumulators.
    bytes_in = p.dtype.itemsize + g.dtype.itemsize + mk.dtype.itemsize
    per_lane = _SUBLANE * (2 * N * bytes_in + 3 * 4)
    tk_budget = max(_LANE, (_VMEM_BUDGET // per_lane) // _LANE * _LANE)

    if k_inner <= _LANE:
        tk = k_inner                      # single full-dim tile (no 128 constraint)
    else:
        tk = min(tk_budget, _round_up(pl.cdiv(k_inner, _NCORES), _LANE))

    num_tiles = pl.cdiv(k_inner, tk)
    kt_per_core = pl.cdiv(num_tiles, _NCORES)
    needs_mask = (_NCORES * kt_per_core * tk) != k_inner
    last_tile = num_tiles - 1

    def in_map(c, k):
        # Clamp so a core assigned tiles past the array never indexes out of bounds;
        # the in-kernel validity mask zeroes any such tile's contribution.
        return (0, 0, jnp.minimum(c * kt_per_core + k, last_tile))

    out_shape = jax.ShapeDtypeStruct((_NCORES, _SUBLANE, _LANE), jnp.float32)
    out_spec = pl.BlockSpec((1, _SUBLANE, _LANE), lambda c, k: (c, 0, 0))

    vmem_used = per_lane * tk + 3 * _NCORES * _SUBLANE * _LANE * 4
    vmem_limit = int(min(max(32 << 20, vmem_used * 5 // 4 + (4 << 20)), 48 << 20))

    kernel = functools.partial(
        _bce_weighted_kernel, inv_n=1.0 / N, k_inner=k_inner, tk=tk,
        kt_per_core=kt_per_core, needs_mask=needs_mask)

    a, b, msum = pl.pallas_call(
        kernel,
        out_shape=(out_shape, out_shape, out_shape),
        grid_spec=pltpu.PrefetchScalarGridSpec(
            num_scalar_prefetch=0,
            grid=(_NCORES, kt_per_core),
            in_specs=[pl.BlockSpec((N, S, tk), in_map)] * 3,
            out_specs=[out_spec] * 3,
            scratch_shapes=[pltpu.VMEM((S, tk), jnp.float32)] * 3,
        ),
        compiler_params=pltpu.CompilerParams(
            dimension_semantics=("parallel", "arbitrary"),
            vmem_limit_bytes=vmem_limit),
        cost_estimate=pl.CostEstimate(
            flops=int((3 * N + 12) * K),
            transcendentals=int(2 * K),
            bytes_accessed=int(p.nbytes + g.nbytes + mk.nbytes)),
    )(p, g, mk)

    # Tiny scalar epilogue: combine per-core partials and finish the weighted BCE.
    a_sum = jnp.sum(a[:, 0, 0])
    b_sum = jnp.sum(b[:, 0, 0])
    m_sum = jnp.sum(msum[:, 0, 0])
    unknown_w = m_sum / cnt
    coef = (1.0 - unknown_w) / (unknown_w + eps)
    return (coef * a_sum + b_sum) / cnt


def bce_weighted_ref(pred, gt, mask, eps=1e-5):
    """Pure-JAX reference mirroring the PyTorch module."""
    p = jnp.mean(pred, axis=0, keepdims=True)
    g = jnp.mean(gt, axis=0, keepdims=True)
    mk = jnp.mean(mask, axis=0, keepdims=True)
    c, h, w = p.shape[1], p.shape[2], p.shape[3]
    cnt = c * h * w
    unknown_w = jnp.sum(mk) / cnt
    known_w = 1.0 - unknown_w
    coef = known_w / (unknown_w + eps)
    loss = coef * g * jax.nn.softplus(-p) + (1.0 - g) * jax.nn.softplus(p)
    return jnp.mean(loss)


if __name__ == "__main__":
    key = jax.random.PRNGKey(0)
    k1, k2, k3 = jax.random.split(key, 3)
    shape = (2, 4, 16, 16)                                      # NCHW like PyTorch
    pred = jax.random.normal(k1, shape, jnp.float32)            # logits
    gt = jax.random.uniform(k2, shape, jnp.float32)             # targets in [0, 1]
    mask = (jax.random.uniform(k3, shape, jnp.float32) > 0.5).astype(jnp.float32)

    loss = jax.jit(bce_weighted)(pred, gt, mask)
    loss = jax.block_until_ready(loss)

    ref = bce_weighted_ref(pred, gt, mask)
    assert bool(jnp.isfinite(loss)), loss
    assert bool(jnp.allclose(loss, ref, rtol=1e-4, atol=1e-5)), (float(loss), float(ref))
    print("KERNEL_OK")
</pallas_src>

<mosaic_0001>
module attributes {stable_mosaic.version = 11 : i64} {
  func.func @_bce_weighted_kernel(%arg0: i32, %arg1: i32, %arg2: memref<2x8x128xf32, #tpu.memory_space<vmem>>, %arg3: memref<2x8x128xf32, #tpu.memory_space<vmem>>, %arg4: memref<2x8x128xf32, #tpu.memory_space<vmem>>, %arg5: memref<1x8x128xf32, #tpu.memory_space<vmem>>, %arg6: memref<1x8x128xf32, #tpu.memory_space<vmem>>, %arg7: memref<1x8x128xf32, #tpu.memory_space<vmem>>, %arg8: memref<8x128xf32, #tpu.memory_space<vmem>>, %arg9: memref<8x128xf32, #tpu.memory_space<vmem>>, %arg10: memref<8x128xf32, #tpu.memory_space<vmem>>) attributes {dimension_semantics = [#tpu.dimension_semantics<parallel>, #tpu.dimension_semantics<arbitrary>], iteration_bounds = array<i64: 2, 1>, scalar_prefetch = 0 : i64, scratch_operands = 3 : i64, tpu.core_type = #tpu.core_type<tc>, window_params = [{transform_indices = @transform_0, window_bounds = array<i64: 2, 8, 128>}, {transform_indices = @transform_1, window_bounds = array<i64: 2, 8, 128>}, {transform_indices = @transform_2, window_bounds = array<i64: 2, 8, 128>}, {transform_indices = @transform_3, window_bounds = array<i64: 1, 8, 128>}, {transform_indices = @transform_4, window_bounds = array<i64: 1, 8, 128>}, {transform_indices = @transform_5, window_bounds = array<i64: 1, 8, 128>}]} {
    %c0_i32 = arith.constant 0 : i32
    %0 = arith.cmpi eq, %arg1, %c0_i32 : i32
    %1 = arith.extui %0 : i1 to i32
    %c0_i32_0 = arith.constant 0 : i32
    %2 = arith.cmpi ne, %1, %c0_i32_0 : i32
    scf.if %2 {
      %cst_35 = arith.constant 0.000000e+00 : f32
      %54 = vector.broadcast %cst_35 : f32 to vector<8x128xf32>
      %c0_36 = arith.constant 0 : index
      %c0_37 = arith.constant 0 : index
      %55 = vector.load %arg8[%c0_36, %c0_37] : memref<8x128xf32, #tpu.memory_space<vmem>>, vector<8x128xf32>
      tpu.vector_store %arg8[%c0_36, %c0_37], %54 {strides = array<i32>} : memref<8x128xf32, #tpu.memory_space<vmem>>, vector<8x128xf32>,
      %cst_38 = arith.constant 0.000000e+00 : f32
      %56 = vector.broadcast %cst_38 : f32 to vector<8x128xf32>
      %c0_39 = arith.constant 0 : index
      %c0_40 = arith.constant 0 : index
      %57 = vector.load %arg9[%c0_39, %c0_40] : memref<8x128xf32, #tpu.memory_space<vmem>>, vector<8x128xf32>
      tpu.vector_store %arg9[%c0_39, %c0_40], %56 {strides = array<i32>} : memref<8x128xf32, #tpu.memory_space<vmem>>, vector<8x128xf32>,
      %cst_41 = arith.constant 0.000000e+00 : f32
      %58 = vector.broadcast %cst_41 : f32 to vector<8x128xf32>
      %c0_42 = arith.constant 0 : index
      %c0_43 = arith.constant 0 : index
      %59 = vector.load %arg10[%c0_42, %c0_43] : memref<8x128xf32, #tpu.memory_space<vmem>>, vector<8x128xf32>
      tpu.vector_store %arg10[%c0_42, %c0_43], %58 {strides = array<i32>} : memref<8x128xf32, #tpu.memory_space<vmem>>, vector<8x128xf32>,
    } else {
    }
    %c0 = arith.constant 0 : index
    %c0_1 = arith.constant 0 : index
    %c0_2 = arith.constant 0 : index
    %3 = vector.load %arg2[%c0, %c0_1, %c0_2] : memref<2x8x128xf32, #tpu.memory_space<vmem>>, vector<2x8x128xf32>
    %cst = arith.constant dense<0.000000e+00> : vector<8x128xf32>
    %4 = vector.multi_reduction <add>, %3, %cst [0] : vector<2x8x128xf32> to vector<8x128xf32>
    %cst_3 = arith.constant 5.000000e-01 : f32
    %5 = vector.broadcast %cst_3 : f32 to vector<8x128xf32>
    %6 = arith.mulf %4, %5 : vector<8x128xf32>
    %c0_4 = arith.constant 0 : index
    %c0_5 = arith.constant 0 : index
    %c0_6 = arith.constant 0 : index
    %7 = vector.load %arg3[%c0_4, %c0_5, %c0_6] : memref<2x8x128xf32, #tpu.memory_space<vmem>>, vector<2x8x128xf32>
    %cst_7 = arith.constant dense<0.000000e+00> : vector<8x128xf32>
    %8 = vector.multi_reduction <add>, %7, %cst_7 [0] : vector<2x8x128xf32> to vector<8x128xf32>
    %cst_8 = arith.constant 5.000000e-01 : f32
    %9 = vector.broadcast %cst_8 : f32 to vector<8x128xf32>
    %10 = arith.mulf %8, %9 : vector<8x128xf32>
    %c0_9 = arith.constant 0 : index
    %c0_10 = arith.constant 0 : index
    %c0_11 = arith.constant 0 : index
    %11 = vector.load %arg4[%c0_9, %c0_10, %c0_11] : memref<2x8x128xf32, #tpu.memory_space<vmem>>, vector<2x8x128xf32>
    %cst_12 = arith.constant dense<0.000000e+00> : vector<8x128xf32>
    %12 = vector.multi_reduction <add>, %11, %cst_12 [0] : vector<2x8x128xf32> to vector<8x128xf32>
    %cst_13 = arith.constant 5.000000e-01 : f32
    %13 = vector.broadcast %cst_13 : f32 to vector<8x128xf32>
    %14 = arith.mulf %12, %13 : vector<8x128xf32>
    %cst_14 = arith.constant 0.000000e+00 : f32
    %15 = vector.broadcast %cst_14 : f32 to vector<8x128xf32>
    %16 = arith.maximumf %6, %15 : vector<8x128xf32>
    %17 = math.absf %6 : vector<8x128xf32>
    %cst_15 = arith.constant 0.000000e+00 : f32
    %18 = vector.broadcast %cst_15 : f32 to vector<8x128xf32>
    %19 = arith.subf %18, %17 : vector<8x128xf32>
    %20 = math.exp %19 : vector<8x128xf32>
    %21 = math.log1p %20 : vector<8x128xf32>
    %22 = arith.addf %16, %21 : vector<8x128xf32>
    %23 = arith.subf %22, %6 : vector<8x128xf32>
    %24 = arith.mulf %10, %23 : vector<8x128xf32>
    %cst_16 = arith.constant 1.000000e+00 : f32
    %25 = vector.broadcast %cst_16 : f32 to vector<8x128xf32>
    %26 = arith.subf %25, %10 : vector<8x128xf32>
    %27 = arith.mulf %26, %22 : vector<8x128xf32>
    %28 = tpu.iota {dimensions = array<i32: 1>} : vector<8x128xi32>
    %c1_i32 = arith.constant 1 : i32
    %29 = arith.muli %arg0, %c1_i32 : i32
    %30 = arith.addi %29, %arg1 : i32
    %c128_i32 = arith.constant 128 : i32
    %31 = arith.muli %30, %c128_i32 : i32
    %32 = vector.broadcast %31 : i32 to vector<8x128xi32>
    %33 = arith.addi %32, %28 : vector<8x128xi32>
    %c128_i32_17 = arith.constant 128 : i32
    %34 = vector.broadcast %c128_i32_17 : i32 to vector<8x128xi32>
    %35 = arith.cmpi slt, %33, %34 : vector<8x128xi32>
    %cst_18 = arith.constant 0.000000e+00 : f32
    %36 = vector.broadcast %cst_18 : f32 to vector<8x128xf32>
    %37 = arith.select %35, %24, %36 : vector<8x128xi1>, vector<8x128xf32>
    %cst_19 = arith.constant 0.000000e+00 : f32
    %38 = vector.broadcast %cst_19 : f32 to vector<8x128xf32>
    %39 = arith.select %35, %27, %38 : vector<8x128xi1>, vector<8x128xf32>
    %cst_20 = arith.constant 0.000000e+00 : f32
    %40 = vector.broadcast %cst_20 : f32 to vector<8x128xf32>
    %41 = arith.select %35, %14, %40 : vector<8x128xi1>, vector<8x128xf32>
    %c0_21 = arith.constant 0 : index
    %c0_22 = arith.constant 0 : index
    %42 = vector.load %arg8[%c0_21, %c0_22] : memref<8x128xf32, #tpu.memory_space<vmem>>, vector<8x128xf32>
    %43 = arith.addf %42, %37 : vector<8x128xf32>
    %c0_23 = arith.constant 0 : index
    %c0_24 = arith.constant 0 : index
    %44 = vector.load %arg8[%c0_23, %c0_24] : memref<8x128xf32, #tpu.memory_space<vmem>>, vector<8x128xf32>
    tpu.vector_store %arg8[%c0_23, %c0_24], %43 {strides = array<i32>} : memref<8x128xf32, #tpu.memory_space<vmem>>, vector<8x128xf32>,
    %c0_25 = arith.constant 0 : index
    %c0_26 = arith.constant 0 : index
    %45 = vector.load %arg9[%c0_25, %c0_26] : memref<8x128xf32, #tpu.memory_space<vmem>>, vector<8x128xf32>
    %46 = arith.addf %45, %39 : vector<8x128xf32>
    %c0_27 = arith.constant 0 : index
    %c0_28 = arith.constant 0 : index
    %47 = vector.load %arg9[%c0_27, %c0_28] : memref<8x128xf32, #tpu.memory_space<vmem>>, vector<8x128xf32>
    tpu.vector_store %arg9[%c0_27, %c0_28], %46 {strides = array<i32>} : memref<8x128xf32, #tpu.memory_space<vmem>>, vector<8x128xf32>,
    %c0_29 = arith.constant 0 : index
    %c0_30 = arith.constant 0 : index
    %48 = vector.load %arg10[%c0_29, %c0_30] : memref<8x128xf32, #tpu.memory_space<vmem>>, vector<8x128xf32>
    %49 = arith.addf %48, %41 : vector<8x128xf32>
    %c0_31 = arith.constant 0 : index
    %c0_32 = arith.constant 0 : index
    %50 = vector.load %arg10[%c0_31, %c0_32] : memref<8x128xf32, #tpu.memory_space<vmem>>, vector<8x128xf32>
    tpu.vector_store %arg10[%c0_31, %c0_32], %49 {strides = array<i32>} : memref<8x128xf32, #tpu.memory_space<vmem>>, vector<8x128xf32>,
    %c0_i32_33 = arith.constant 0 : i32
    %51 = arith.cmpi eq, %arg1, %c0_i32_33 : i32
    %52 = arith.extui %51 : i1 to i32
    %c0_i32_34 = arith.constant 0 : i32
    %53 = arith.cmpi ne, %52, %c0_i32_34 : i32
    scf.if %53 {
      %c0_35 = arith.constant 0 : index
      %c0_36 = arith.constant 0 : index
      %54 = vector.load %arg8[%c0_35, %c0_36] : memref<8x128xf32, #tpu.memory_space<vmem>>, vector<8x128xf32>
      %55 = vector.shape_cast %54 : vector<8x128xf32> to vector<1x8x128xf32>
      %cst_37 = arith.constant dense<0.000000e+00> : vector<1xf32>
      %56 = vector.multi_reduction <add>, %55, %cst_37 [1, 2] : vector<1x8x128xf32> to vector<1xf32>
      %57 = vector.shape_cast %56 : vector<1xf32> to vector<1x1x1xf32>
      %58 = vector.extract %57[0, 0, 0] : f32 from vector<1x1x1xf32>
      %59 = vector.broadcast %58 : f32 to vector<1x8x128xf32>
      %c0_38 = arith.constant 0 : index
      %c0_39 = arith.constant 0 : index
      %c0_40 = arith.constant 0 : index
      %60 = vector.load %arg5[%c0_38, %c0_39, %c0_40] : memref<1x8x128xf32, #tpu.memory_space<vmem>>, vector<1x8x128xf32>
      tpu.vector_store %arg5[%c0_38, %c0_39, %c0_40], %59 {strides = array<i32>} : memref<1x8x128xf32, #tpu.memory_space<vmem>>, vector<1x8x128xf32>,
      %c0_41 = arith.constant 0 : index
      %c0_42 = arith.constant 0 : index
      %61 = vector.load %arg9[%c0_41, %c0_42] : memref<8x128xf32, #tpu.memory_space<vmem>>, vector<8x128xf32>
      %62 = vector.shape_cast %61 : vector<8x128xf32> to vector<1x8x128xf32>
      %cst_43 = arith.constant dense<0.000000e+00> : vector<1xf32>
      %63 = vector.multi_reduction <add>, %62, %cst_43 [1, 2] : vector<1x8x128xf32> to vector<1xf32>
      %64 = vector.shape_cast %63 : vector<1xf32> to vector<1x1x1xf32>
      %65 = vector.extract %64[0, 0, 0] : f32 from vector<1x1x1xf32>
      %66 = vector.broadcast %65 : f32 to vector<1x8x128xf32>
      %c0_44 = arith.constant 0 : index
      %c0_45 = arith.constant 0 : index
      %c0_46 = arith.constant 0 : index
      %67 = vector.load %arg6[%c0_44, %c0_45, %c0_46] : memref<1x8x128xf32, #tpu.memory_space<vmem>>, vector<1x8x128xf32>
      tpu.vector_store %arg6[%c0_44, %c0_45, %c0_46], %66 {strides = array<i32>} : memref<1x8x128xf32, #tpu.memory_space<vmem>>, vector<1x8x128xf32>,
      %c0_47 = arith.constant 0 : index
      %c0_48 = arith.constant 0 : index
      %68 = vector.load %arg10[%c0_47, %c0_48] : memref<8x128xf32, #tpu.memory_space<vmem>>, vector<8x128xf32>
      %69 = vector.shape_cast %68 : vector<8x128xf32> to vector<1x8x128xf32>
      %cst_49 = arith.constant dense<0.000000e+00> : vector<1xf32>
      %70 = vector.multi_reduction <add>, %69, %cst_49 [1, 2] : vector<1x8x128xf32> to vector<1xf32>
      %71 = vector.shape_cast %70 : vector<1xf32> to vector<1x1x1xf32>
      %72 = vector.extract %71[0, 0, 0] : f32 from vector<1x1x1xf32>
      %73 = vector.broadcast %72 : f32 to vector<1x8x128xf32>
      %c0_50 = arith.constant 0 : index
      %c0_51 = arith.constant 0 : index
      %c0_52 = arith.constant 0 : index
      %74 = vector.load %arg7[%c0_50, %c0_51, %c0_52] : memref<1x8x128xf32, #tpu.memory_space<vmem>>, vector<1x8x128xf32>
      tpu.vector_store %arg7[%c0_50, %c0_51, %c0_52], %73 {strides = array<i32>} : memref<1x8x128xf32, #tpu.memory_space<vmem>>, vector<1x8x128xf32>,
    } else {
    }
    return
  }
  func.func @transform_0(%arg0: i32, %arg1: i32) -> (i32, i32, i32) {
    %c1_i32 = arith.constant 1 : i32
    %0 = arith.muli %arg0, %c1_i32 : i32
    %1 = arith.addi %0, %arg1 : i32
    %c0_i32 = arith.constant 0 : i32
    %2 = arith.minsi %1, %c0_i32 : i32
    %c0_i32_0 = arith.constant 0 : i32
    %c0_i32_1 = arith.constant 0 : i32
    %c0_i32_2 = arith.constant 0 : i32
    return %c0_i32_0, %c0_i32_1, %2 : i32, i32, i32
  }
  func.func @transform_1(%arg0: i32, %arg1: i32) -> (i32, i32, i32) {
    %c1_i32 = arith.constant 1 : i32
    %0 = arith.muli %arg0, %c1_i32 : i32
    %1 = arith.addi %0, %arg1 : i32
    %c0_i32 = arith.constant 0 : i32
    %2 = arith.minsi %1, %c0_i32 : i32
    %c0_i32_0 = arith.constant 0 : i32
    %c0_i32_1 = arith.constant 0 : i32
    %c0_i32_2 = arith.constant 0 : i32
    return %c0_i32_0, %c0_i32_1, %2 : i32, i32, i32
  }
  func.func @transform_2(%arg0: i32, %arg1: i32) -> (i32, i32, i32) {
    %c1_i32 = arith.constant 1 : i32
    %0 = arith.muli %arg0, %c1_i32 : i32
    %1 = arith.addi %0, %arg1 : i32
    %c0_i32 = arith.constant 0 : i32
    %2 = arith.minsi %1, %c0_i32 : i32
    %c0_i32_0 = arith.constant 0 : i32
    %c0_i32_1 = arith.constant 0 : i32
    %c0_i32_2 = arith.constant 0 : i32
    return %c0_i32_0, %c0_i32_1, %2 : i32, i32, i32
  }
  func.func @transform_3(%arg0: i32, %arg1: i32) -> (i32, i32, i32) {
    %c0_i32 = arith.constant 0 : i32
    %c0_i32_0 = arith.constant 0 : i32
    %c0_i32_1 = arith.constant 0 : i32
    return %arg0, %c0_i32, %c0_i32_0 : i32, i32, i32
  }
  func.func @transform_4(%arg0: i32, %arg1: i32) -> (i32, i32, i32) {
    %c0_i32 = arith.constant 0 : i32
    %c0_i32_0 = arith.constant 0 : i32
    %c0_i32_1 = arith.constant 0 : i32
    return %arg0, %c0_i32, %c0_i32_0 : i32, i32, i32
  }
  func.func @transform_5(%arg0: i32, %arg1: i32) -> (i32, i32, i32) {
    %c0_i32 = arith.constant 0 : i32
    %c0_i32_0 = arith.constant 0 : i32
    %c0_i32_1 = arith.constant 0 : i32
    return %arg0, %c0_i32, %c0_i32_0 : i32, i32, i32
  }
}

</mosaic_0001>

<bundles_post_ra>
// kernel: bce_weighted.1
= control target key start
LH: loop header
LB: loop body
LE: loop exit
PB: predicated region body
PF: predicated region fallthrough
CT: control target
= control target key end

     0   :  { %s704_s18 = smov 0   ;;  %s706_s19 = smov 0   ;;  %s759_s0 = inlined_call_operand.vmem [shape: f32[2,8,128], index: 0, kind: input, shape index: {}]   ;;  %s760_s1 = inlined_call_operand.vmem [shape: f32[2,8,128], index: 1, kind: input, shape index: {}]   ;;  %s761_s2 = inlined_call_operand.vmem [shape: f32[2,8,128], index: 2, kind: input, shape index: {}]   ;;  %s762_s3 = inlined_call_operand.vmem [shape: f32[2,8,128], index: 3, kind: output, shape index: {0}]   ;;  %s763_s4 = inlined_call_operand.vmem [shape: f32[2,8,128], index: 4, kind: output, shape index: {1}]   ;;  %s764_s5 = inlined_call_operand.vmem [shape: f32[2,8,128], index: 5, kind: output, shape index: {2}]  }
   0x1   :  { %s708_s20 = smov 0  }
   0x2 LB: > { %s28_s21 = sadd.s32 1, %s668_s19  ;;  %p597_p0 = scmp.ge.s32.totalorder %s672_s20, 1  ;;  %s672_s20 = sphi %s708_s20, %s16_s20   ;;  %s668_s19 = sphi %s706_s19, %s766_s19   ;;  %s664_s18 = sphi %s704_s18, %s765_s18  }
   0x3   : > { %p30_p1 = scmp.ge.s32.totalorder %s28_s21, 2  ;;  %p257_p2 = scmp.lt.s32.totalorder %s672_s20, 3 }
   0x5   : > { %s768_s21 = smov (%p30_p1, %s28_s21), 0  ;;  %p258_p3 = pnand %p597_p0, %p257_p2 }
   0x6   : > { %p309_p4 = scmp.lt.s32.totalorder (!%p258_p3), %s664_s18, 0  ;;  %v388_v0 = vlaneseq (!%p258_p3)  ;;  %s613_s22 = sshll.u32 (!%p258_p3), %s664_s18, 7 }
   0x7   : > { %261 = sbr.rel (%p258_p3) target bundleno = 276 (0x114), region = 32  ;;  %v392_v2 = vstv (!%p258_p3), %s613_s22  ;;  %p338_p5 = scmp.lt.s32.totalorder (!%p258_p3), %s664_s18, 1 }
   0x8   : > { %v389_v1 = vand.u32 (!%p258_p3), 127, %v388_v0 }
   0xa   : > { %v393_v3 = vadd.s32 (!%p258_p3), %v392_v2, %v389_v1 }
   0xc   : > { %vm394_vm0 = vcmp.lt.s32.totalorder (!%p258_p3), %v393_v3, 128 }
   0xe   : > { %s310_s23 = scalar_select %p309_p4, %s664_s18, 0 }
   0xf   : > { %s772_s18 = smov (!%p338_p5, %s664_s18), 1 }
  0x10   : > { %s770_s23 = smov (!%p309_p4, %s310_s23), 0  ;;  %s610_s9 = sshll.u32 %s772_s18, 3 }
  0x11   : > { %s601_s24 = sshll.u32 %s770_s23, 3  ;;  %s341_s12 = scalar_lea.vmem %s762_s3, %s610_s9 }
  0x12   : > { %s334_s27 = scalar_lea.vmem %s761_s2, %s601_s24  ;;  %s314_s30 = scalar_lea.vmem %s759_s0, %s601_s24 }
  0x13   : > { %v365_v4 = vld [vmem:[%s334_s27] sm:$0xff]  ;;  %v366_v5 = vld [vmem:[%s334_s27 + $0x8] sm:$0xff]  ;;  %s324_s8 = scalar_lea.vmem %s760_s1, %s601_s24  ;;  %s345_s16 = scalar_lea.vmem %s763_s4, %s610_s9 }
  0x14   : > { %v357_v6 = vld [vmem:[%s314_s30] sm:$0xff]  ;;  %v367_v7 = vadd.f32 %v366_v5, %v365_v4  ;;  %v358_v8 = vld [vmem:[%s314_s30 + $0x8] sm:$0xff]  ;;  %s349_s24 = scalar_lea.vmem %s764_s5, %s610_s9 }
  0x15   : > { %v359_v9 = vadd.f32 %v358_v8, %v357_v6  ;;  %v361_v19 = vld [vmem:[%s324_s8] sm:$0xff]  ;;  %v362_v20 = vld [vmem:[%s324_s8 + $0x8] sm:$0xff] }
  0x16   : > { %v368_v10 = vmul.f32 0.5, %v367_v7  ;;  %v363_v23 = vadd.f32 %v362_v20, %v361_v19 }
  0x17   : > { %v360_v11 = vmul.f32 0.5, %v359_v9 }
  0x18   : > { %v397_v12 = vsel %vm394_vm0, %v368_v10, 0.0  ;;  %v364_v28 = vmul.f32 0.5, %v363_v23 }
  0x19   : > { %435 = vadd.xlane.f32.xlu1 %v397_v12  ;;  %v370_v13 = vand.u32 2147483647, %v360_v11  ;;  %v369_v26 = vmax.f32 %v360_v11, 0.0 }
  0x1a   : > { %v386_v31 = vsub.f32 1.0, %v364_v28 }
  0x1b   : > { %v371_v14 = vsub.f32 0.0, %v370_v13 }
  0x1d   : > { %v372_v15 = vmul.f32 1.442695, %v371_v14 }
  0x1f   : > { %646 = vpow2.f32 %v372_v15 }
  0x29   : > { %v647_v16 = vpop.eup %646 }
  0x2a   : > { %v374_v17 = vadd.f32 1.0, %v647_v16  ;;  %v377_v18 = vmul.f32 -0.5, %v647_v16  ;;  %v380_v22 = vand.u32 2147483647, %v647_v16 }
  0x2c   : > { %648 = vlog2.f32 %v374_v17  ;;  %v378_v21 = vadd.f32 1.0, %v377_v18  ;;  %vm381_vm1 = vcmp.lt.f32.partialorder %v380_v22, 0.0004427343 }
  0x2e   : > { %v379_v24 = vmul.f32 %v647_v16, %v378_v21 }
  0x36   : > { %v649_v25 = vpop.eup %648 }
  0x37   : > { %v376_v27 = vmul.f32 0.6931472, %v649_v25 }
  0x39   : > { %v382_v29 = vsel %vm381_vm1, %v379_v24, %v376_v27 }
  0x3a   : > { %v383_v30 = vadd.f32 %v382_v29, %v369_v26 }
  0x3c   : > { %v384_v32 = vsub.f32 %v383_v30, %v360_v11  ;;  %v387_v34 = vmul.f32 %v386_v31, %v383_v30 }
  0x3e   : > { %v385_v33 = vmul.f32 %v384_v32, %v364_v28  ;;  %v396_v36 = vsel %vm394_vm0, %v387_v34, 0.0 }
  0x40   : > { %v395_v35 = vsel %vm394_vm0, %v385_v33, 0.0 }
  0x41   : > { %411 = vadd.xlane.f32.xlu0 %v395_v35 }
  0x45   : > { %423 = vadd.xlane.f32.xlu0 %v396_v36 }
  0xa6   : > { %v436_v37 = vpop.xlane.xlu1 %435 }
  0xa7   : > { %v437_v38 = vrot.slane %v436_v37, 4 }
  0xa9   : > { %v438_v39 = vadd.f32 %v437_v38, %v436_v37 }
  0xab   : > { %v439_v43 = vrot.slane %v438_v39, 2 }
  0xad   : > { %v440_v49 = vadd.f32 %v439_v43, %v438_v39 }
  0xaf   : > { %v441_v54 = vrot.slane %v440_v49, 1 }
  0xb1   : > { %v442_v57 = vadd.f32 %v441_v54, %v440_v49 }
  0xce   : > { %v412_v40 = vpop.xlane.xlu0 %411 }
  0xcf   : > { %v413_v41 = vrot.slane %v412_v40, 4 }
  0xd1   : > { %v414_v42 = vadd.f32 %v413_v41, %v412_v40 }
  0xd2   : > { %v424_v44 = vpop.xlane.xlu0 %423 }
  0xd3   : > { %v415_v45 = vrot.slane %v414_v42, 2  ;;  %v425_v46 = vrot.slane %v424_v44, 4 }
  0xd5   : > { %v426_v47 = vadd.f32 %v425_v46, %v424_v44  ;;  %v416_v48 = vadd.f32 %v415_v45, %v414_v42 }
  0xd7   : > { %v427_v50 = vrot.slane %v426_v47, 2  ;;  %v417_v51 = vrot.slane %v416_v48, 1 }
  0xd9   : > { %v428_v52 = vadd.f32 %v427_v50, %v426_v47  ;;  %v418_v53 = vadd.f32 %v417_v51, %v416_v48 }
  0xdb   : > { %616 = vpush %v418_v53  ;;  %v429_v55 = vrot.slane %v428_v52, 1 }
  0xdd   : > { %v430_v56 = vadd.f32 %v429_v55, %v428_v52 }
  0xdf   : > { %618 = vpush %v430_v56 }
  0xe0   : > { %620 = vpush %v442_v57 }
 0x10c   : > { %s617_s13 = spop %616 }
 0x10d   : > { %v420_v58 = vstv %s617_s13 }
 0x10e   : > { %421 = vst [vmem:[%s341_s12] sm:$0xff] %v420_v58 }
 0x110   : > { %s619_s17 = spop %618 }
 0x111   : > { %v432_v59 = vstv %s619_s17  ;;  %s621_s25 = spop %620 }
 0x112   : > { %433 = vst [vmem:[%s345_s16] sm:$0xff] %v432_v59  ;;  %v444_v60 = vstv %s621_s25 }
 0x113   : > { %445 = vst [vmem:[%s349_s24] sm:$0xff] %v444_v60 }
 0x114 PF: > { %s16_s20 = sadd.s32 1, %s672_s20   ;;  %s765_s18 = smov %s668_s19 }
 0x115   : > { %p13_p6 = scmp.ge.s32.totalorder %s16_s20, 4   ;;  %s766_s19 = smov %s768_s21 }
 0x117   :  { %15 = sbr.rel (!%p13_p6) target bundleno = 2 (0x2), region = 100 }

</bundles_post_ra>
